<compile_context>
chip_gen: v7x
topology: tpu7x:2x2x1
jax: 0.10.0
libtpu: 0.0.40
codegen_flags: <defaults>
</compile_context>

<pallas_src>
import functools

import jax
import jax.numpy as jnp
from jax import lax
from jax.experimental import pallas as pl
from jax.experimental.pallas import tpu as pltpu


def _round_up(v, m):
    return (v + m - 1) // m * m


def _vmem_capacity_bytes():
    try:
        return int(pltpu.get_tpu_info().vmem_capacity_bytes)
    except Exception:
        return 64 * 1024 * 1024      # conservative fallback (v7x per-TC VMEM)


def _pick_h_tile(H, W, C_in, ec_pad, b_tile, budget_bytes):
    """Largest divisor of H whose working set fits the budget; prefer >=2 row
    tiles so the BlockSpec pipeline can overlap the input DMA with compute."""
    wp = W + 2

    def vmem_need(ht):
        # double-buffered input window (lane-padded), f32 conv slab, weights, acc
        slab = 2 * b_tile * (ht + 2) * _round_up(wp, 8) * max(_round_up(C_in, 128), 128) * 4
        conv = b_tile * ht * W * ec_pad * 4
        wts = 9 * max(_round_up(C_in, 8), 8) * ec_pad * 4
        return slab + conv + wts + 2 * b_tile * ec_pad * 4

    divisors = [d for d in range(1, H + 1) if H % d == 0]
    fitting = [d for d in divisors if vmem_need(d) <= budget_bytes]
    ht = max(fitting) if fitting else 1
    if ht == H and H % 2 == 0 and vmem_need(H // 2) <= budget_bytes:
        ht = H // 2                   # force >=2 grid steps (DMA/compute overlap)
    return ht


def _ensemble_conv_kernel(inv_hw, x_ref, w_ref, b_ref, feats_ref, acc_ref):
    """One (batch block, row tile) step: in-kernel im2col -> 9 accumulated
    MXU matmuls -> bias+ReLU -> partial global-average-pool into acc_ref."""
    t = pl.program_id(1)

    @pl.when(t == 0)
    def _():
        acc_ref[...] = jnp.zeros_like(acc_ref)

    # Padded row window for this tile: [b_tile, h_tile+2, W+2, C_in].
    # Upcast once so tap slicing / reshaping happens on plain f32 layouts;
    # operands are cast back to the MXU dtype right before each dot.
    slab = x_ref[...].astype(jnp.float32)
    bt, hp2, wp, c_in = slab.shape
    h_tile, w_out = hp2 - 2, wp - 2
    rows = bt * h_tile * w_out
    ec_pad = w_ref.shape[-1]

    conv = jnp.zeros((rows, ec_pad), jnp.float32)
    for k in range(w_ref.shape[0]):                       # 9 taps, unrolled
        kh, kw = k // 3, k % 3
        tap = slab[:, kh:kh + h_tile, kw:kw + w_out, :]   # [bt, h_tile, W, C_in]
        # Collapse leading dims only (layout-preserving since W % 8 == 0).
        tap = tap.reshape(rows, c_in).astype(w_ref.dtype)
        conv = conv + jnp.dot(tap, w_ref[k],
                              preferred_element_type=jnp.float32)
    # TODO(synk): optionally fold the conv bias into the matmul (ones column) if
    # VALU ever becomes the binding slot; kept as one add under MXU/DMA slack.
    conv = jnp.maximum(conv + b_ref[...], 0.0)            # bias + ReLU (f32)

    # Partial global-average-pool sums per batch row.
    acc_ref[...] += conv.reshape(bt, h_tile * w_out, ec_pad).sum(axis=1)

    @pl.when(t == pl.num_programs(1) - 1)
    def _():
        feats_ref[0, :, :] = (acc_ref[...] * inv_hw).astype(feats_ref.dtype)


def ensemble_forward(x, params, num_classes, head_dim, *,
                     training=False, auxiliary=True,
                     h_tile=None, split_batch=None,
                     compute_dtype=jnp.bfloat16):
    """Mirrors EnsembleModel.forward: returns (outs, cat_feats)."""
    convw, convb, headw, headb = params
    B, C_in, H, W = x.shape
    E, C_out, CK = convw.shape
    K = 3
    assert CK == C_in * K * K
    assert W % 8 == 0, "W must be a multiple of 8 (layout-preserving reshape)"
    NCHD = num_classes * head_dim
    EC = E * C_out
    EC_pad = _round_up(EC, 128)        # lane-dense feats / MXU N fill
    Wp = W + 2

    # Batch 'parallel' axis (lets v7x shard across its 2 TensorCores).
    if split_batch is None:
        split_batch = (B % 2 == 0) and B >= 2
    n_b = 2 if split_batch else 1
    b_tile = B // n_b
    assert n_b * b_tile == B

    vmem_cap = _vmem_capacity_bytes()
    if h_tile is None:
        h_tile = _pick_h_tile(H, W, C_in, EC_pad, b_tile, vmem_cap // 4)
    assert H % h_tile == 0
    n_t = H // h_tile

    # ---- input prep: NHWC, 'same' zero pad, overlapping row windows ---------
    # Only the 2-row halos are duplicated (~(h_tile+2)/h_tile x input bytes),
    # replacing the 9x im2col slab + full relayout of v2.
    x_nhwc = jnp.transpose(x, (0, 2, 3, 1))
    xp = jnp.pad(x_nhwc, ((0, 0), (1, 1), (1, 1), (0, 0))).astype(compute_dtype)
    x_tiles = jnp.stack(
        [xp[:, t * h_tile: t * h_tile + h_tile + 2] for t in range(n_t)],
        axis=0)                                            # [n_t, B, h_tile+2, Wp, C_in]
    x_tiles = x_tiles.reshape(n_t * B, h_tile + 2, Wp, C_in)

    # ---- per-tap conv weights [9, C_in, EC_pad], zero-padded columns --------
    w4 = convw.reshape(E, C_out, C_in, K, K)
    w_taps = jnp.transpose(w4, (3, 4, 2, 0, 1)).reshape(K * K, C_in, EC)
    w_taps = jnp.pad(w_taps, ((0, 0), (0, 0), (0, EC_pad - EC))).astype(compute_dtype)
    b_all = jnp.pad(convb.reshape(1, EC), ((0, 0), (0, EC_pad - EC))).astype(jnp.float32)
    # TODO(synk): at real C_in, also pad the tap contraction dim toward the MXU
    # tile (or concatenate taps to CK) for better systolic-depth fill.

    kernel = functools.partial(_ensemble_conv_kernel, float(1.0 / (H * W)))

    flops = 2 * B * H * W * (C_in * K * K) * EC_pad
    bytes_accessed = (x_tiles.size * x_tiles.dtype.itemsize
                      + w_taps.size * w_taps.dtype.itemsize
                      + b_all.size * 4 + B * EC_pad * 4)

    feats_pad = pl.pallas_call(
        kernel,
        out_shape=jax.ShapeDtypeStruct((n_b, b_tile, EC_pad), jnp.float32),
        grid_spec=pltpu.PrefetchScalarGridSpec(
            num_scalar_prefetch=0,
            grid=(n_b, n_t),
            in_specs=[
                # padded row window for (batch block bb, row tile t)
                pl.BlockSpec((b_tile, h_tile + 2, Wp, C_in),
                             lambda bb, t: (t * n_b + bb, 0, 0, 0)),
                pl.BlockSpec((K * K, C_in, EC_pad), lambda bb, t: (0, 0, 0)),
                pl.BlockSpec((1, EC_pad), lambda bb, t: (0, 0)),
            ],
            out_specs=pl.BlockSpec((1, b_tile, EC_pad), lambda bb, t: (bb, 0, 0)),
            scratch_shapes=[pltpu.VMEM((b_tile, EC_pad), jnp.float32)],  # GAP acc
        ),
        compiler_params=pltpu.CompilerParams(
            # Row-tile axis is a reduction into the resident accumulator
            # ("arbitrary"); the batch axis is independent ("parallel").
            dimension_semantics=("parallel", "arbitrary"),
            vmem_limit_bytes=int(min(vmem_cap // 2, 96 * 1024 * 1024))),
        cost_estimate=pl.CostEstimate(flops=int(flops), transcendentals=0,
                                      bytes_accessed=int(bytes_accessed)),
    )(x_tiles, w_taps, b_all)

    # == torch.cat(feats, dim=1); padded lanes sliced off.
    cat_feats = feats_pad.reshape(B, EC_pad)[:, :EC]

    # ---- class heads: tiny [B,EC]x[EC,NCHD] GEMM, done in XLA (review #6) ---
    headw_all = jnp.transpose(headw, (0, 2, 1)).reshape(EC, NCHD) / E   # /E folded
    headb_avg = headb.reshape(E, NCHD).mean(axis=0, keepdims=True)
    logits_avg = cat_feats @ headw_all + headb_avg
    outs = [logits_avg[:, j * head_dim:(j + 1) * head_dim]
            for j in range(num_classes)]

    if training and auxiliary:
        # F.normalize(cat_feats, dim=1) — tiny elementwise glue, kept in JAX.
        nrm = jnp.maximum(jnp.sqrt(jnp.sum(cat_feats * cat_feats, axis=1,
                                           keepdims=True)), 1e-12)
        return outs, [cat_feats / nrm]
    return outs, cat_feats


def _reference(x, params, num_classes, head_dim):
    """Plain-JAX (f32) reference for correctness checking."""
    convw, convb, headw, headb = params
    B, C_in, H, W = x.shape
    E, C_out, CK = convw.shape
    K = 3
    feats_list, logits_list = [], []
    for e in range(E):
        w4 = convw[e].reshape(C_out, C_in, K, K)
        conv = lax.conv_general_dilated(
            x, w4, (1, 1), "SAME",
            dimension_numbers=("NCHW", "OIHW", "NCHW"))
        conv = conv + convb[e, 0][None, :, None, None]
        conv = jnp.maximum(conv, 0.0)
        f = jnp.mean(conv, axis=(2, 3))                      # [B, C_out]
        feats_list.append(f)
        logits_list.append(f @ headw[e].T + headb[e, 0])
    logits_avg = sum(logits_list) / E
    outs = [logits_avg[:, j * head_dim:(j + 1) * head_dim]
            for j in range(num_classes)]
    return outs, jnp.concatenate(feats_list, axis=1)


if __name__ == "__main__":
    B, C_in, H, W = 2, 4, 16, 16
    E = 3               # number of archs in the ensemble
    C_out = 32          # backbone feature width per member
    num_classes = 3
    head_dim = 2
    K = 3
    CK = C_in * K * K
    NCHD = num_classes * head_dim

    key = jax.random.PRNGKey(0)
    k1, k2, k3, k4, k5 = jax.random.split(key, 5)
    x = jax.random.normal(k1, (B, C_in, H, W), jnp.float32)
    convw = jax.random.normal(k2, (E, C_out, CK), jnp.float32) * (1.0 / CK ** 0.5)
    convb = jax.random.normal(k3, (E, 1, C_out), jnp.float32) * 0.1
    headw = jax.random.normal(k4, (E, NCHD, C_out), jnp.float32) * (1.0 / C_out ** 0.5)
    headb = jax.random.normal(k5, (E, 1, NCHD), jnp.float32) * 0.1
    params = (convw, convb, headw, headb)

    ref_outs, ref_feats = _reference(x, params, num_classes, head_dim)

    # 1) Default path: bf16 MXU operands, auto h_tile (>=2 row tiles), batch-
    #    parallel grid axis.  bf16 operands => looser tolerance vs f32 reference.
    outs, cat_feats = ensemble_forward(x, params, num_classes, head_dim)
    jax.block_until_ready((outs, cat_feats))
    for o, r in zip(outs, ref_outs):
        assert jnp.allclose(o, r, atol=3e-2, rtol=3e-2), "bf16 head logits mismatch"
    assert jnp.allclose(cat_feats, ref_feats, atol=3e-2, rtol=3e-2), "bf16 feats mismatch"

    # 2) f32 operands, 4 row tiles, no batch split — tight-tolerance check of
    #    the in-kernel im2col and the tiled GAP accumulator.
    outs2, cat_feats2 = ensemble_forward(x, params, num_classes, head_dim,
                                         h_tile=4, split_batch=False,
                                         compute_dtype=jnp.float32)
    jax.block_until_ready((outs2, cat_feats2))
    for o, r in zip(outs2, ref_outs):
        assert jnp.allclose(o, r, atol=1e-4, rtol=1e-4), "f32 head logits mismatch"
    assert jnp.allclose(cat_feats2, ref_feats, atol=1e-4, rtol=1e-4), "f32 feats mismatch"

    # 3) training/auxiliary path (normalized concatenated features).
    outs3, aux = ensemble_forward(x, params, num_classes, head_dim,
                                  training=True, auxiliary=True)
    jax.block_until_ready((outs3, aux))

    # TODO(synk): the PyTorch inner classifiers are arbitrary torchvision-style
    # archs; here they are synthesized as conv->relu->GAP->linear heads since
    # the module definition does not pin them down.
    print("KERNEL_OK")
</pallas_src>

<mosaic_0001>
module attributes {stable_mosaic.version = 11 : i64} {
  func.func @_ensemble_conv_kernel(%arg0: i32, %arg1: i32, %arg2: memref<1x10x18x4xbf16, #tpu.memory_space<vmem>>, %arg3: memref<9x4x128xbf16, #tpu.memory_space<vmem>>, %arg4: memref<1x128xf32, #tpu.memory_space<vmem>>, %arg5: memref<1x1x128xf32, #tpu.memory_space<vmem>>, %arg6: memref<1x128xf32, #tpu.memory_space<vmem>>) attributes {dimension_semantics = [#tpu.dimension_semantics<parallel>, #tpu.dimension_semantics<arbitrary>], iteration_bounds = array<i64: 2, 2>, scalar_prefetch = 0 : i64, scratch_operands = 1 : i64, tpu.core_type = #tpu.core_type<tc>, window_params = [{transform_indices = @transform_0, window_bounds = array<i64: 1, 10, 18, 4>}, {pipeline_mode = #tpu.pipeline_mode<synchronous>, transform_indices = @transform_1, window_bounds = array<i64: 9, 4, 128>}, {pipeline_mode = #tpu.pipeline_mode<synchronous>, transform_indices = @transform_2, window_bounds = array<i64: 1, 128>}, {transform_indices = @transform_3, window_bounds = array<i64: 1, 1, 128>}]} {
    %c0_i32 = arith.constant 0 : i32
    %0 = arith.cmpi eq, %arg1, %c0_i32 : i32
    %1 = arith.extui %0 : i1 to i32
    %c0_i32_0 = arith.constant 0 : i32
    %2 = arith.cmpi ne, %1, %c0_i32_0 : i32
    scf.if %2 {
      %cst_41 = arith.constant 0.000000e+00 : f32
      %82 = vector.broadcast %cst_41 : f32 to vector<1x128xf32>
      %c0_42 = arith.constant 0 : index
      %c0_43 = arith.constant 0 : index
      %83 = vector.load %arg6[%c0_42, %c0_43] : memref<1x128xf32, #tpu.memory_space<vmem>>, vector<1x128xf32>
      tpu.vector_store %arg6[%c0_42, %c0_43], %82 {strides = array<i32>} : memref<1x128xf32, #tpu.memory_space<vmem>>, vector<1x128xf32>,
    } else {
    }
    %c0 = arith.constant 0 : index
    %c0_1 = arith.constant 0 : index
    %c0_2 = arith.constant 0 : index
    %c0_3 = arith.constant 0 : index
    %3 = vector.load %arg2[%c0, %c0_1, %c0_2, %c0_3] : memref<1x10x18x4xbf16, #tpu.memory_space<vmem>>, vector<1x10x18x4xbf16>
    %4 = arith.extf %3 : vector<1x10x18x4xbf16> to vector<1x10x18x4xf32>
    %cst = arith.constant 0.000000e+00 : f32
    %5 = vector.broadcast %cst : f32 to vector<128x128xf32>
    %6 = vector.extract_strided_slice %4 {offsets = [0, 0, 0, 0], sizes = [1, 8, 16, 4], strides = [1, 1, 1, 1]} : vector<1x10x18x4xf32> to vector<1x8x16x4xf32>
    %7 = vector.shape_cast %6 : vector<1x8x16x4xf32> to vector<128x4xf32>
    %8 = arith.truncf %7 : vector<128x4xf32> to vector<128x4xbf16>
    %c0_4 = arith.constant 0 : index
    %c0_5 = arith.constant 0 : index
    %c0_6 = arith.constant 0 : index
    %9 = vector.load %arg3[%c0_4, %c0_5, %c0_6] : memref<9x4x128xbf16, #tpu.memory_space<vmem>>, vector<1x4x128xbf16>
    %10 = vector.shape_cast %9 : vector<1x4x128xbf16> to vector<4x128xbf16>
    %cst_7 = arith.constant dense<0.000000e+00> : vector<128x128xf32>
    %11 = tpu.matmul %8, %10, %cst_7 {dimension_numbers = #tpu.dot_dimension_numbers<[1], [0], [0], [1], [0, 0, 1, 1], [], []>} : vector<128x4xbf16>, vector<4x128xbf16>, vector<128x128xf32> -> vector<128x128xf32>
    %12 = arith.addf %5, %11 : vector<128x128xf32>
    %13 = vector.extract_strided_slice %4 {offsets = [0, 0, 1, 0], sizes = [1, 8, 16, 4], strides = [1, 1, 1, 1]} : vector<1x10x18x4xf32> to vector<1x8x16x4xf32>
    %14 = vector.shape_cast %13 : vector<1x8x16x4xf32> to vector<128x4xf32>
    %15 = arith.truncf %14 : vector<128x4xf32> to vector<128x4xbf16>
    %c1 = arith.constant 1 : index
    %c0_8 = arith.constant 0 : index
    %c0_9 = arith.constant 0 : index
    %16 = vector.load %arg3[%c1, %c0_8, %c0_9] : memref<9x4x128xbf16, #tpu.memory_space<vmem>>, vector<1x4x128xbf16>
    %17 = vector.shape_cast %16 : vector<1x4x128xbf16> to vector<4x128xbf16>
    %cst_10 = arith.constant dense<0.000000e+00> : vector<128x128xf32>
    %18 = tpu.matmul %15, %17, %cst_10 {dimension_numbers = #tpu.dot_dimension_numbers<[1], [0], [0], [1], [0, 0, 1, 1], [], []>} : vector<128x4xbf16>, vector<4x128xbf16>, vector<128x128xf32> -> vector<128x128xf32>
    %19 = arith.addf %12, %18 : vector<128x128xf32>
    %20 = vector.extract_strided_slice %4 {offsets = [0, 0, 2, 0], sizes = [1, 8, 16, 4], strides = [1, 1, 1, 1]} : vector<1x10x18x4xf32> to vector<1x8x16x4xf32>
    %21 = vector.shape_cast %20 : vector<1x8x16x4xf32> to vector<128x4xf32>
    %22 = arith.truncf %21 : vector<128x4xf32> to vector<128x4xbf16>
    %c2 = arith.constant 2 : index
    %c0_11 = arith.constant 0 : index
    %c0_12 = arith.constant 0 : index
    %23 = vector.load %arg3[%c2, %c0_11, %c0_12] : memref<9x4x128xbf16, #tpu.memory_space<vmem>>, vector<1x4x128xbf16>
    %24 = vector.shape_cast %23 : vector<1x4x128xbf16> to vector<4x128xbf16>
    %cst_13 = arith.constant dense<0.000000e+00> : vector<128x128xf32>
    %25 = tpu.matmul %22, %24, %cst_13 {dimension_numbers = #tpu.dot_dimension_numbers<[1], [0], [0], [1], [0, 0, 1, 1], [], []>} : vector<128x4xbf16>, vector<4x128xbf16>, vector<128x128xf32> -> vector<128x128xf32>
    %26 = arith.addf %19, %25 : vector<128x128xf32>
    %27 = vector.extract_strided_slice %4 {offsets = [0, 1, 0, 0], sizes = [1, 8, 16, 4], strides = [1, 1, 1, 1]} : vector<1x10x18x4xf32> to vector<1x8x16x4xf32>
    %28 = vector.shape_cast %27 : vector<1x8x16x4xf32> to vector<128x4xf32>
    %29 = arith.truncf %28 : vector<128x4xf32> to vector<128x4xbf16>
    %c3 = arith.constant 3 : index
    %c0_14 = arith.constant 0 : index
    %c0_15 = arith.constant 0 : index
    %30 = vector.load %arg3[%c3, %c0_14, %c0_15] : memref<9x4x128xbf16, #tpu.memory_space<vmem>>, vector<1x4x128xbf16>
    %31 = vector.shape_cast %30 : vector<1x4x128xbf16> to vector<4x128xbf16>
    %cst_16 = arith.constant dense<0.000000e+00> : vector<128x128xf32>
    %32 = tpu.matmul %29, %31, %cst_16 {dimension_numbers = #tpu.dot_dimension_numbers<[1], [0], [0], [1], [0, 0, 1, 1], [], []>} : vector<128x4xbf16>, vector<4x128xbf16>, vector<128x128xf32> -> vector<128x128xf32>
    %33 = arith.addf %26, %32 : vector<128x128xf32>
    %34 = vector.extract_strided_slice %4 {offsets = [0, 1, 1, 0], sizes = [1, 8, 16, 4], strides = [1, 1, 1, 1]} : vector<1x10x18x4xf32> to vector<1x8x16x4xf32>
    %35 = vector.shape_cast %34 : vector<1x8x16x4xf32> to vector<128x4xf32>
    %36 = arith.truncf %35 : vector<128x4xf32> to vector<128x4xbf16>
    %c4 = arith.constant 4 : index
    %c0_17 = arith.constant 0 : index
    %c0_18 = arith.constant 0 : index
    %37 = vector.load %arg3[%c4, %c0_17, %c0_18] : memref<9x4x128xbf16, #tpu.memory_space<vmem>>, vector<1x4x128xbf16>
    %38 = vector.shape_cast %37 : vector<1x4x128xbf16> to vector<4x128xbf16>
    %cst_19 = arith.constant dense<0.000000e+00> : vector<128x128xf32>
    %39 = tpu.matmul %36, %38, %cst_19 {dimension_numbers = #tpu.dot_dimension_numbers<[1], [0], [0], [1], [0, 0, 1, 1], [], []>} : vector<128x4xbf16>, vector<4x128xbf16>, vector<128x128xf32> -> vector<128x128xf32>
    %40 = arith.addf %33, %39 : vector<128x128xf32>
    %41 = vector.extract_strided_slice %4 {offsets = [0, 1, 2, 0], sizes = [1, 8, 16, 4], strides = [1, 1, 1, 1]} : vector<1x10x18x4xf32> to vector<1x8x16x4xf32>
    %42 = vector.shape_cast %41 : vector<1x8x16x4xf32> to vector<128x4xf32>
    %43 = arith.truncf %42 : vector<128x4xf32> to vector<128x4xbf16>
    %c5 = arith.constant 5 : index
    %c0_20 = arith.constant 0 : index
    %c0_21 = arith.constant 0 : index
    %44 = vector.load %arg3[%c5, %c0_20, %c0_21] : memref<9x4x128xbf16, #tpu.memory_space<vmem>>, vector<1x4x128xbf16>
    %45 = vector.shape_cast %44 : vector<1x4x128xbf16> to vector<4x128xbf16>
    %cst_22 = arith.constant dense<0.000000e+00> : vector<128x128xf32>
    %46 = tpu.matmul %43, %45, %cst_22 {dimension_numbers = #tpu.dot_dimension_numbers<[1], [0], [0], [1], [0, 0, 1, 1], [], []>} : vector<128x4xbf16>, vector<4x128xbf16>, vector<128x128xf32> -> vector<128x128xf32>
    %47 = arith.addf %40, %46 : vector<128x128xf32>
    %48 = vector.extract_strided_slice %4 {offsets = [0, 2, 0, 0], sizes = [1, 8, 16, 4], strides = [1, 1, 1, 1]} : vector<1x10x18x4xf32> to vector<1x8x16x4xf32>
    %49 = vector.shape_cast %48 : vector<1x8x16x4xf32> to vector<128x4xf32>
    %50 = arith.truncf %49 : vector<128x4xf32> to vector<128x4xbf16>
    %c6 = arith.constant 6 : index
    %c0_23 = arith.constant 0 : index
    %c0_24 = arith.constant 0 : index
    %51 = vector.load %arg3[%c6, %c0_23, %c0_24] : memref<9x4x128xbf16, #tpu.memory_space<vmem>>, vector<1x4x128xbf16>
    %52 = vector.shape_cast %51 : vector<1x4x128xbf16> to vector<4x128xbf16>
    %cst_25 = arith.constant dense<0.000000e+00> : vector<128x128xf32>
    %53 = tpu.matmul %50, %52, %cst_25 {dimension_numbers = #tpu.dot_dimension_numbers<[1], [0], [0], [1], [0, 0, 1, 1], [], []>} : vector<128x4xbf16>, vector<4x128xbf16>, vector<128x128xf32> -> vector<128x128xf32>
    %54 = arith.addf %47, %53 : vector<128x128xf32>
    %55 = vector.extract_strided_slice %4 {offsets = [0, 2, 1, 0], sizes = [1, 8, 16, 4], strides = [1, 1, 1, 1]} : vector<1x10x18x4xf32> to vector<1x8x16x4xf32>
    %56 = vector.shape_cast %55 : vector<1x8x16x4xf32> to vector<128x4xf32>
    %57 = arith.truncf %56 : vector<128x4xf32> to vector<128x4xbf16>
    %c7 = arith.constant 7 : index
    %c0_26 = arith.constant 0 : index
    %c0_27 = arith.constant 0 : index
    %58 = vector.load %arg3[%c7, %c0_26, %c0_27] : memref<9x4x128xbf16, #tpu.memory_space<vmem>>, vector<1x4x128xbf16>
    %59 = vector.shape_cast %58 : vector<1x4x128xbf16> to vector<4x128xbf16>
    %cst_28 = arith.constant dense<0.000000e+00> : vector<128x128xf32>
    %60 = tpu.matmul %57, %59, %cst_28 {dimension_numbers = #tpu.dot_dimension_numbers<[1], [0], [0], [1], [0, 0, 1, 1], [], []>} : vector<128x4xbf16>, vector<4x128xbf16>, vector<128x128xf32> -> vector<128x128xf32>
    %61 = arith.addf %54, %60 : vector<128x128xf32>
    %62 = vector.extract_strided_slice %4 {offsets = [0, 2, 2, 0], sizes = [1, 8, 16, 4], strides = [1, 1, 1, 1]} : vector<1x10x18x4xf32> to vector<1x8x16x4xf32>
    %63 = vector.shape_cast %62 : vector<1x8x16x4xf32> to vector<128x4xf32>
    %64 = arith.truncf %63 : vector<128x4xf32> to vector<128x4xbf16>
    %c8 = arith.constant 8 : index
    %c0_29 = arith.constant 0 : index
    %c0_30 = arith.constant 0 : index
    %65 = vector.load %arg3[%c8, %c0_29, %c0_30] : memref<9x4x128xbf16, #tpu.memory_space<vmem>>, vector<1x4x128xbf16>
    %66 = vector.shape_cast %65 : vector<1x4x128xbf16> to vector<4x128xbf16>
    %cst_31 = arith.constant dense<0.000000e+00> : vector<128x128xf32>
    %67 = tpu.matmul %64, %66, %cst_31 {dimension_numbers = #tpu.dot_dimension_numbers<[1], [0], [0], [1], [0, 0, 1, 1], [], []>} : vector<128x4xbf16>, vector<4x128xbf16>, vector<128x128xf32> -> vector<128x128xf32>
    %68 = arith.addf %61, %67 : vector<128x128xf32>
    %c0_32 = arith.constant 0 : index
    %c0_33 = arith.constant 0 : index
    %69 = vector.load %arg4[%c0_32, %c0_33] : memref<1x128xf32, #tpu.memory_space<vmem>>, vector<1x128xf32>
    %70 = vector.broadcast %69 : vector<1x128xf32> to vector<128x128xf32>
    %71 = arith.addf %68, %70 : vector<128x128xf32>
    %cst_34 = arith.constant 0.000000e+00 : f32
    %72 = vector.broadcast %cst_34 : f32 to vector<128x128xf32>
    %73 = arith.maximumf %71, %72 : vector<128x128xf32>
    %c0_35 = arith.constant 0 : index
    %c0_36 = arith.constant 0 : index
    %74 = vector.load %arg6[%c0_35, %c0_36] : memref<1x128xf32, #tpu.memory_space<vmem>>, vector<1x128xf32>
    %75 = vector.shape_cast %73 : vector<128x128xf32> to vector<1x128x128xf32>
    %cst_37 = arith.constant dense<0.000000e+00> : vector<1x128xf32>
    %76 = vector.multi_reduction <add>, %75, %cst_37 [1] : vector<1x128x128xf32> to vector<1x128xf32>
    %77 = arith.addf %74, %76 : vector<1x128xf32>
    %c0_38 = arith.constant 0 : index
    %c0_39 = arith.constant 0 : index
    %78 = vector.load %arg6[%c0_38, %c0_39] : memref<1x128xf32, #tpu.memory_space<vmem>>, vector<1x128xf32>
    tpu.vector_store %arg6[%c0_38, %c0_39], %77 {strides = array<i32>} : memref<1x128xf32, #tpu.memory_space<vmem>>, vector<1x128xf32>,
    %c1_i32 = arith.constant 1 : i32
    %79 = arith.cmpi eq, %arg1, %c1_i32 : i32
    %80 = arith.extui %79 : i1 to i32
    %c0_i32_40 = arith.constant 0 : i32
    %81 = arith.cmpi ne, %80, %c0_i32_40 : i32
    scf.if %81 {
      %c0_41 = arith.constant 0 : index
      %c0_42 = arith.constant 0 : index
      %82 = vector.load %arg6[%c0_41, %c0_42] : memref<1x128xf32, #tpu.memory_space<vmem>>, vector<1x128xf32>
      %cst_43 = arith.constant 3.906250e-03 : f32
      %83 = vector.broadcast %cst_43 : f32 to vector<1x128xf32>
      %84 = arith.mulf %82, %83 : vector<1x128xf32>
      %c0_44 = arith.constant 0 : index
      %c0_45 = arith.constant 0 : index
      %c0_46 = arith.constant 0 : index
      %85 = vector.load %arg5[%c0_44, %c0_45, %c0_46] : memref<1x1x128xf32, #tpu.memory_space<vmem>>, vector<1x1x128xf32>
      %86 = vector.shape_cast %85 : vector<1x1x128xf32> to vector<1x128xf32>
      %87 = vector.shape_cast %84 : vector<1x128xf32> to vector<1x1x128xf32>
      tpu.vector_store %arg5[%c0_44, %c0_45, %c0_46], %87 {strides = array<i32>} : memref<1x1x128xf32, #tpu.memory_space<vmem>>, vector<1x1x128xf32>,
    } else {
    }
    return
  }
  func.func @transform_0(%arg0: i32, %arg1: i32) -> (i32, i32, i32, i32) {
    %c2_i32 = arith.constant 2 : i32
    %0 = arith.muli %arg1, %c2_i32 : i32
    %1 = arith.addi %0, %arg0 : i32
    %c0_i32 = arith.constant 0 : i32
    %c0_i32_0 = arith.constant 0 : i32
    %c0_i32_1 = arith.constant 0 : i32
    %c0_i32_2 = arith.constant 0 : i32
    return %1, %c0_i32, %c0_i32_0, %c0_i32_1 : i32, i32, i32, i32
  }
  func.func @transform_1(%arg0: i32, %arg1: i32) -> (i32, i32, i32) {
    %c0_i32 = arith.constant 0 : i32
    %c0_i32_0 = arith.constant 0 : i32
    %c0_i32_1 = arith.constant 0 : i32
    %c0_i32_2 = arith.constant 0 : i32
    return %c0_i32, %c0_i32_0, %c0_i32_1 : i32, i32, i32
  }
  func.func @transform_2(%arg0: i32, %arg1: i32) -> (i32, i32) {
    %c0_i32 = arith.constant 0 : i32
    %c0_i32_0 = arith.constant 0 : i32
    %c0_i32_1 = arith.constant 0 : i32
    return %c0_i32, %c0_i32_0 : i32, i32
  }
  func.func @transform_3(%arg0: i32, %arg1: i32) -> (i32, i32, i32) {
    %c0_i32 = arith.constant 0 : i32
    %c0_i32_0 = arith.constant 0 : i32
    %c0_i32_1 = arith.constant 0 : i32
    return %arg0, %c0_i32, %c0_i32_0 : i32, i32, i32
  }
}

</mosaic_0001>

<bundles_post_ra>
// kernel: tpu_custom_call.1
= control target key start
LH: loop header
LB: loop body
LE: loop exit
PB: predicated region body
PF: predicated region fallthrough
CT: control target
= control target key end

     0   :  { %8 = vsyncpa [#allocation4], 0  ;;  %s2969_s0 = inlined_call_operand.vmem [shape: bf16[4,10,18,4], index: 0, kind: input, shape index: {}]   ;;  %s2970_s1 = inlined_call_operand.vmem [shape: bf16[9,4,128], index: 1, kind: input, shape index: {}]   ;;  %s2971_s2 = inlined_call_operand.vmem [shape: f32[1,128], index: 2, kind: input, shape index: {}]   ;;  %s2972_s3 = inlined_call_operand.hbm [shape: f32[2,1,128], index: 3, kind: output, shape index: {}]  }
   0x1   :  { %10 = vsyncpa [#allocation4 + $0x1], 0  ;;  %s2431_s12 = smov 0   ;;  %s2433_s13 = smov 0  }
   0x2   :  { %s2435_s14 = smov 0   ;;  %s2437_s15 = smov 0  }
   0x3   :  { %s2439_s16 = smov 0   ;;  %s2441_s17 = smov 0  }
   0x4   :  { %s2443_s18 = smov 0   ;;  %s2445_s19 = smov 0  }
   0x5 LB: > { %s1732_s20 = sadd.s32 4294967295, %s2407_s19   ;;  %s1733_s21 = sadd.s32 4294967294, %s2407_s19   ;;  %s2407_s19 = sphi %s2445_s19, %s16_s19   ;;  %s2403_s18 = sphi %s2443_s18, %s2981_s18   ;;  %s2399_s17 = sphi %s2441_s17, %s2980_s17   ;;  %s2395_s16 = sphi %s2439_s16, %s2979_s16   ;;  %s2391_s15 = sphi %s2437_s15, %s2978_s15   ;;  %s2387_s14 = sphi %s2435_s14, %s2977_s14   ;;  %s2383_s13 = sphi %s2433_s13, %s2976_s13   ;;  %s2379_s12 = sphi %s2431_s12, %s2975_s12  }
   0x6   : > { %s25_s22 = sadd.s32 1, %s2399_s17  ;;  %s28_s23 = sadd.s32 1, %s2403_s18 }
   0x7   : > { %p26_p0 = scmp.ge.s32.totalorder %s25_s22, 2  ;;  %p117_p1 = scmp.ne.s32.totalorder %s2387_s14, %s2383_s13 }
   0x8   : > { %p118_p2 = scmp.eq.s32.totalorder %s1732_s20, 3  ;;  %p123_p4 = scmp.ne.s32.totalorder %s2383_s13, %s2379_s12 }
   0x9   : > { %s2983_s22 = smov (%p26_p0, %s25_s22), 0  ;;  %s2985_s23 = smov (!%p26_p0, %s28_s23), %s2403_s18 }
   0xa   : > { %p2480_p3 = por %p118_p2, %p117_p1  ;;  %p30_p5 = scmp.ge.s32.totalorder %s2985_s23, 2 }
   0xb   : > { %p124_p6 = scmp.eq.s32.totalorder %s1733_s21, 3  ;;  %p1738_p7 = scmp.ge.s32.totalorder %s2407_s19, 1 }
   0xc   : > { %p160_p8 = scmp.lt.s32.totalorder %s2407_s19, 5  ;;  %s2987_s23 = smov (%p30_p5, %s2985_s23), 0 }
   0xd   : > { %p2490_p9 = por %p124_p6, %p123_p4  ;;  %s104_s26 = ssub.s32 %s2403_s18, %s2987_s23 }
   0xe   : > { %p161_p10 = pnand %p1738_p7, %p160_p8  ;;  %s107_s27 = sadd.s32 1, %s2387_s14 }
   0xf   : > { %p105_p11 = scmp.eq.s32.totalorder %s104_s26, 0  ;;  %s183_s29 = sand.u32 (!%p161_p10), 1, %s2383_s13  }
  0x10   : > { %164 = sbr.rel (%p161_p10) target bundleno = 456 (0x1c8), region = 32  ;;  %s1739_s30 = sshll.u32 (!%p161_p10), %s2391_s15, 1 }
  0x11   : > { %s2498_s28 = scalar_select %p105_p11, %s2387_s14, %s107_s27  }
  0x12   : > { %s186_s4 = sadd.s32 (!%p161_p10), %s2395_s16, %s1739_s30  ;;  %s2510_s9 = scalar_lea.vmem (!%p161_p10), [#allocation3], %s183_s29 }
  0x13   : > { %p187_p12 = scmp.lt.s32.totalorder (!%p161_p10), %s186_s4, 3  ;;  %p1741_p13 = scmp.ne.s32.totalorder (!%p161_p10), %s2391_s15, 0 }
  0x17   : > { %s2989_s4 = smov (!%p187_p12, %s186_s4), 3  ;;  %198 = sbr.rel (%p1741_p13) target bundleno = 30 (0x1e), region = 36 }
  0x18   : > { %s2220_s5 = smul.u32 120, %s2989_s4  ;;  %v2409_v0 = vmov (!%p1741_p13), 0.0  }
  0x19   : > { %199 = vst [vmem:[#allocation2] sm:$0x1] (!%p1741_p13), %v2409_v0 }
  0x1a   : > { %s2506_s8 = scalar_lea.vmem %s2969_s0, %s2220_s5 }
  0x1e PF: > { %v1750_v1 = vld [vmem:[%s2970_s1 + $0x2] sm:$0x3]  ;;  %vm385_vm0 = vcmask 1041408   ;;  %v2519_v2 = vld [vmem:[%s2970_s1 + $0x8] sm:$0x3]  ;;  %vm293_vm1 = vcmask 1046528  }
  0x1f   : > { %v2522_v3 = vld [vmem:[%s2506_s8] sm:$0xff]   ;;  %2210 = vmatprep.subr.msk.bf16.mxu1 %vm385_vm0, %v1750_v1  ;;  %2214 = vmatprep.subr.msk.bf16.mxu0 %vm385_vm0, %v2519_v2  ;;  %v387_v4 = vsel %vm385_vm0, %v1750_v1, 0  ;;  %v2530_v5 = vsel %vm385_vm0, %v2519_v2, 0  ;;  %v2533_v6 = vld [vmem:[%s2506_s8 + $0x8] sm:$0x1]  ;;  %v2543_v11 = vld [vmem:[%s2506_s8 + $0xc] sm:$0xff]  }
  0x20   : > { %v230_v7 = vunpack.c.l.bf16 %v2522_v3  ;;  %v231_v8 = vunpack.c.h.bf16 %v2522_v3  ;;  %v268_v9 = vld [vmem:[%s2970_s1] sm:$0x3]  ;;  %1919 = vmatpush3.bf16.msra.mxu1 %v387_v4  ;;  %1991 = vmatpush3.bf16.msra.mxu0 %v2530_v5  ;;  %v232_v10 = vunpack.c.l.bf16 %v2533_v6  ;;  %v205_v12 = vld [vmem:[%s2506_s8 + $0x14] sm:$0x1]  ;;  %v1795_v15 = vld [vmem:[%s2970_s1 + $0xa] sm:$0x3]  ;;  %v233_v17 = vunpack.c.l.bf16 %v2543_v11 }
  0x21   : > { %2211 = vmatprep.subr.msk.bf16.mxu1 %vm385_vm0, %v268_v9  ;;  %v234_v18 = vunpack.c.h.bf16 %v2543_v11  ;;  %2216 = vmatprep.subr.msk.bf16.mxu0 %vm385_vm0, %v1795_v15  ;;  %v2560_v19 = vld [vmem:[%s2506_s8 + $0x18] sm:$0xff]   ;;  %v235_v21 = vunpack.c.l.bf16 %v205_v12  ;;  %v2564_v22 = vld [vmem:[%s2506_s8 + $0x20] sm:$0x1]  ;;  %vm360_vm2 = vcmask 31744   ;;  %v2569_v27 = vld [vmem:[%s2506_s8 + $0x24] sm:$0xff]   ;;  %v511_v30 = vsel %vm385_vm0, %v268_v9, 0 }
  0x22   : > { %v294_v13 = vrot.slane %v230_v7, 1  ;;  %v295_v14 = vrot.slane %v231_v8, 1  ;;  %v297_v16 = vrot.slane %v232_v10, 1  ;;  %v236_v23 = vunpack.c.l.bf16 %v2560_v19  ;;  %v2578_v35 = vld [vmem:[%s2506_s8 + $0x2c] sm:$0x1]  ;;  %v2584_v40 = vld [vmem:[%s2506_s8 + $0x30] sm:$0xff]  }
  0x23   : > { %v299_v25 = vrot.slane %v233_v17, 1  ;;  %v300_v26 = vrot.slane %v234_v18, 1  ;;  %v302_v29 = vrot.slane %v235_v21, 1  ;;  %v237_v32 = vunpack.c.h.bf16 %v2560_v19  ;;  %v2587_v45 = vld [vmem:[%s2506_s8 + $0x38] sm:$0x1]  ;;  %v2593_v50 = vld [vmem:[%s2506_s8 + $0x3c] sm:$0xff]  }
  0x24   : > { %v296_v20 = vsel %vm293_vm1, %v294_v13, %v295_v14  ;;  %v298_v24 = vsel %vm293_vm1, %v295_v14, %v297_v16  ;;  %v238_v33 = vunpack.c.l.bf16 %v2564_v22  ;;  %v304_v34 = vrot.slane %v236_v23, 1  ;;  %v2598_v51 = vld [vmem:[%s2970_s1 + $0x4] sm:$0x3]  ;;  %v2612_v60 = vld [vmem:[%s2970_s1 + $0xc] sm:$0x3]  ;;  %p1833_p0 = scmp.ne.s32.totalorder %s2391_s15, 1 }
  0x25   : > { %v350_v28 = vpack.c.bf16 %v298_v24, %v296_v20  ;;  %v301_v31 = vsel %vm293_vm1, %v299_v25, %v300_v26  ;;  %v303_v36 = vsel %vm293_vm1, %v300_v26, %v302_v29  ;;  %v616_v37 = vrot.slane %v233_v17, 2  ;;  %v2619_v63 = vld [vmem:[%s2506_s8 + $0x44] sm:$0x1]  ;;  %v2639_v17 = vld [vmem:[%s2506_s8 + $0x48] sm:$0xff]   ;;  %v2648_v22 = vld [vmem:[%s2506_s8 + $0x50] sm:$0x1] }
  0x26   : > { %v617_v38 = vrot.slane %v234_v18, 2  ;;  %v239_v39 = vunpack.c.l.bf16 %v2569_v27  ;;  %v351_v41 = vpack.c.bf16 %v303_v36, %v301_v31  ;;  %v619_v42 = vrot.slane %v235_v21, 2 }
  0x27   : > { %1920 = vmatprep.mubr.msk.bf16.mxu1 %vm360_vm2, %v350_v28  ;;  %v305_v43 = vrot.slane %v237_v32, 1  ;;  %v307_v44 = vrot.slane %v238_v33, 1  ;;  %v1085_v46 = vsel %vm385_vm0, %v1795_v15, 0  ;;  %v240_v47 = vunpack.c.h.bf16 %v2569_v27 }
  0x28   : > { %v241_v48 = vunpack.c.l.bf16 %v2578_v35  ;;  %v309_v49 = vrot.slane %v239_v39, 1  ;;  %1992 = vmatprep.mubr.msk.bf16.mxu0 %vm360_vm2, %v351_v41  ;;  %1921 = vmatmul.mubr.msk.bf16.vlgmr.msra.gmra.mrb[0].mxu1 %vm360_vm2, %v351_v41  ;;  %v242_v54 = vunpack.c.l.bf16 %v2584_v40  ;;  %v243_v55 = vunpack.c.h.bf16 %v2584_v40  ;;  %v2660_v35 = vld [vmem:[%s2506_s8 + $0x54] sm:$0xff]  }
  0x29   : > { %v306_v52 = vsel %vm293_vm1, %v304_v34, %v305_v43  ;;  %v308_v53 = vsel %vm293_vm1, %v305_v43, %v307_v44  ;;  %1937 = vmatpush3.bf16.msra.mxu1 %v511_v30  ;;  %v310_v57 = vrot.slane %v240_v47, 1  ;;  %v244_v59 = vunpack.c.l.bf16 %v2587_v45 }
  0x2a   : > { %v2606_v56 = vpack.c.bf16 %v308_v53, %v306_v52  ;;  %v312_v58 = vrot.slane %v241_v48, 1  ;;  %v314_v61 = vrot.slane %v242_v54, 1  ;;  %v315_v62 = vrot.slane %v243_v55, 1  ;;  %2212 = vmatprep.subr.msk.bf16.mxu1 %vm385_vm0, %v2598_v51 }
  0x2b   : > { %vm610_vm3 = vcmask 1045504   ;;  %v245_v0 = vunpack.c.l.bf16 %v2593_v50  ;;  %v311_v1 = vsel %vm293_vm1, %v309_v49, %v310_v57  ;;  %v317_v9 = vrot.slane %v244_v59, 1 }
  0x2c   : > { %1993 = vmatmul.mubr.msk.bf16.vlgmr.msra.gmra.mrb[0].mxu0 %vm360_vm2, %v2606_v56  ;;  %1924 = vmatprep.mubr.msk.bf16.mxu1 %vm360_vm2, %v2606_v56  ;;  %v313_v4 = vsel %vm293_vm1, %v310_v57, %v312_v58  ;;  %v618_v12 = vsel %vm610_vm3, %v616_v37, %v617_v38  ;;  %v316_v14 = vsel %vm293_vm1, %v314_v61, %v315_v62  ;;  %v246_v16 = vunpack.c.h.bf16 %v2593_v50  ;;  %v223_v37 = vld [vmem:[%s2506_s8 + $0x5c] sm:$0x1] }
  0x2d   : > { %2009 = vmatpush3.bf16.msra.mxu0 %v1085_v46  ;;  %v2633_v13 = vpack.c.bf16 %v313_v4, %v311_v1  ;;  %v620_v15 = vsel %vm610_vm3, %v617_v38, %v619_v42  ;;  %v318_v18 = vsel %vm293_vm1, %v315_v62, %v317_v9  ;;  %v247_v20 = vunpack.c.l.bf16 %v2619_v63 }
  0x2e   : > { %2217 = vmatprep.subr.msk.bf16.mxu0 %vm385_vm0, %v2612_v60  ;;  %v319_v21 = vrot.slane %v245_v0, 1  ;;  %v621_v24 = vrot.slane %v236_v23, 2  ;;  %v622_v25 = vrot.slane %v237_v32, 2  ;;  %v624_v26 = vrot.slane %v238_v33, 2 }
  0x2f   : > { %1996 = vmatprep.mubr.msk.bf16.mxu0 %vm360_vm2, %v2633_v13  ;;  %v320_v28 = vrot.slane %v246_v16, 1  ;;  %v2654_v29 = vpack.c.bf16 %v318_v18, %v316_v14  ;;  %v2656_v30 = vpack.c.bf16 %v620_v15, %v618_v12  ;;  %v322_v31 = vrot.slane %v247_v20, 1 }
  0x30   : > { %v248_v34 = vunpack.c.l.bf16 %v2639_v17  ;;  %1925 = vmatmul.mubr.msk.bf16.gmra.mrb[4].mxu1 %vm360_vm2, %v2633_v13  ;;  %v249_v32 = vunpack.c.h.bf16 %v2639_v17  ;;  %v250_v33 = vunpack.c.l.bf16 %v2648_v22  ;;  %v626_v36 = vrot.slane %v239_v39, 2 }
  0x31   : > { %v321_v23 = vsel %vm293_vm1, %v319_v21, %v320_v28  ;;  %1928 = vmatprep.mubr.msk.bf16.mxu1 %vm360_vm2, %v2654_v29  ;;  %v323_v38 = vsel %vm293_vm1, %v320_v28, %v322_v31  ;;  %v627_v42 = vrot.slane %v240_v47, 2  ;;  %v629_v43 = vrot.slane %v241_v48, 2 }
  0x32   : > { %v324_v41 = vrot.slane %v248_v34, 1  ;;  %v623_v44 = vsel %vm610_vm3, %v621_v24, %v622_v25  ;;  %v325_v46 = vrot.slane %v249_v32, 1  ;;  %v327_v49 = vrot.slane %v250_v33, 1 }
  0x33   : > { %v251_v52 = vunpack.c.l.bf16 %v2660_v35  ;;  %v2675_v53 = vpack.c.bf16 %v323_v38, %v321_v23  ;;  %v625_v39 = vsel %vm610_vm3, %v622_v25, %v624_v26  ;;  %v252_v57 = vunpack.c.h.bf16 %v2660_v35 }
  0x34   : > { %1997 = vmatmul.mubr.msk.bf16.gmra.mrb[4].mxu0 %vm360_vm2, %v2654_v29  ;;  %v253_v58 = vunpack.c.l.bf16 %v223_v37  ;;  %v326_v47 = vsel %vm293_vm1, %v324_v41, %v325_v46  ;;  %v328_v48 = vsel %vm293_vm1, %v325_v46, %v327_v49  ;;  %v628_v61 = vsel %vm610_vm3, %v626_v36, %v627_v42 }
  0x35   : > { %2010 = vmatprep.mubr.msk.bf16.mxu0 %vm360_vm2, %v2656_v30  ;;  %v630_v62 = vsel %vm610_vm3, %v627_v42, %v629_v43  ;;  %v2685_v63 = vpack.c.bf16 %v328_v48, %v326_v47  ;;  %v329_v1 = vrot.slane %v251_v52, 1  ;;  %v330_v4 = vrot.slane %v252_v57, 1  ;;  %v2730_v43 = vld [vmem:[%s2506_s8 + $0x60] sm:$0xff]  }
  0x36   : > { %v332_v9 = vrot.slane %v253_v58, 1  ;;  %v2687_v12 = vpack.c.bf16 %v625_v39, %v623_v44  ;;  %v1207_v14 = vsel %vm385_vm0, %v2612_v60, 0  ;;  %v2691_v15 = vpack.c.bf16 %v630_v62, %v628_v61  ;;  %v2733_v44 = vld [vmem:[%s2506_s8 + $0x68] sm:$0x1]  ;;  %v1777_v47 = vld [vmem:[%s2970_s1 + $0x6] sm:$0x3] }
  0x37   : > { %v631_v18 = vrot.slane %v242_v54, 2  ;;  %v632_v21 = vrot.slane %v243_v55, 2  ;;  %v634_v22 = vrot.slane %v244_v59, 2  ;;  %v636_v24 = vrot.slane %v245_v0, 2  ;;  %v1814_v54 = vld [vmem:[%s2970_s1 + $0xe] sm:$0x3] }
  0x38   : > { %1929 = vmatmul.mubr.msk.bf16.gmra.mrb[8].mxu1 %vm360_vm2, %v2675_v53  ;;  %v331_v60 = vsel %vm293_vm1, %v329_v1, %v330_v4  ;;  %v333_v25 = vsel %vm293_vm1, %v330_v4, %v332_v9  ;;  %v637_v26 = vrot.slane %v246_v16, 2  ;;  %v639_v28 = vrot.slane %v247_v20, 2 }
  0x39   : > { %1932 = vmatprep.mubr.msk.bf16.mxu1 %vm360_vm2, %v2685_v63  ;;  %v2714_v45 = vpack.c.bf16 %v333_v25, %v331_v60  ;;  %v633_v55 = vsel %vm610_vm3, %v631_v18, %v632_v21  ;;  %v635_v59 = vsel %vm610_vm3, %v632_v21, %v634_v22  ;;  %v641_v31 = vrot.slane %v248_v34, 2  ;;  %v229_v25 = vld [vmem:[%s2506_s8 + $0x74] sm:$0x1] }
  0x3a   : > { %v638_v0 = vsel %vm610_vm3, %v636_v24, %v637_v26  ;;  %v640_v16 = vsel %vm610_vm3, %v637_v26, %v639_v28  ;;  %v2721_v20 = vpack.c.bf16 %v635_v59, %v633_v55  ;;  %v642_v23 = vrot.slane %v249_v32, 2 }
  0x3b   : > { %v2725_v36 = vpack.c.bf16 %v640_v16, %v638_v0  ;;  %v644_v37 = vrot.slane %v250_v33, 2  ;;  %v646_v38 = vrot.slane %v251_v52, 2  ;;  %v647_v41 = vrot.slane %v252_v57, 2 }
  0x3c   : > { %2011 = vmatmul.mubr.msk.bf16.vlgmr.msra.gmra.mrb[0].mxu0 %vm360_vm2, %v2687_v12  ;;  %v649_v42 = vrot.slane %v253_v58, 2  ;;  %v643_v34 = vsel %vm610_vm3, %v641_v31, %v642_v23  ;;  %v254_v33 = vunpack.c.l.bf16 %v2730_v43  ;;  %v255_v46 = vunpack.c.h.bf16 %v2730_v43 }
  0x3d   : > { %2027 = vmatpush3.bf16.msra.mxu0 %v1207_v14  ;;  %2014 = vmatprep.mubr.msk.bf16.mxu0 %vm360_vm2, %v2691_v15  ;;  %v645_v32 = vsel %vm610_vm3, %v642_v23, %v644_v37  ;;  %v256_v49 = vunpack.c.l.bf16 %v2733_v44  ;;  %v648_v52 = vsel %vm610_vm3, %v646_v38, %v647_v41  ;;  %v702_v57 = vsel %vm385_vm0, %v2598_v51, 0 }
  0x3e   : > { %2218 = vmatprep.subr.msk.bf16.mxu0 %vm385_vm0, %v1814_v54  ;;  %v650_v39 = vsel %vm610_vm3, %v647_v41, %v649_v42  ;;  %v2748_v58 = vpack.c.bf16 %v645_v32, %v643_v34  ;;  %v1071_v61 = vrot.slane %v254_v33, 2  ;;  %v1072_v62 = vrot.slane %v255_v46, 2  ;;  %v2895_v41 = vld [vmem:[%s2971_s2] ss:$0 sm:$0xff] }
  0x3f   : > { %v2755_v48 = vpack.c.bf16 %v650_v39, %v648_v52  ;;  %v1074_v1 = vrot.slane %v256_v49, 2  ;;  %v611_v14 = vrot.slane %v230_v7, 2  ;;  %v612_v18 = vrot.slane %v231_v8, 2  ;;  %v227_v8 = vld [vmem:[%s2506_s8 + $0x6c] sm:$0xff]  }
  0x40   : > { %1933 = vmatmul.mubr.msk.bf16.gmra.mrb[12].mxu1 %vm360_vm2, %v2714_v45  ;;  %v1073_v51 = vsel %vm610_vm3, %v1071_v61, %v1072_v62  ;;  %v614_v21 = vrot.slane %v232_v10, 2  ;;  %v1339_v22 = vsel %vm385_vm0, %v1814_v54, 0  ;;  %v824_v7 = vsel %vm385_vm0, %v1777_v47, 0 }
  0x41   : > { %1938 = vmatprep.mubr.msk.bf16.mxu1 %vm360_vm2, %v2522_v3  ;;  %v1075_v4 = vsel %vm610_vm3, %v1072_v62, %v1074_v1  ;;  %v613_v24 = vsel %vm610_vm3, %v611_v14, %v612_v18  ;;  %v1823_v3 = vld [vmem:[%s2970_s1 + $0x10] sm:$0x3]  ;;  %v942_v10 = vrot.slane %v254_v33, 1  ;;  %v258_v26 = vunpack.c.h.bf16 %v227_v8 }
  0x42   : > { %v2768_v9 = vpack.c.bf16 %v1075_v4, %v1073_v51  ;;  %v615_v60 = vsel %vm610_vm3, %v612_v18, %v614_v21 }
  0x43   : > { %v667_v6 = vpack.c.bf16 %v615_v60, %v613_v24  ;;  %v1326_v55 = vrot.slane %v258_v26, 1 }
  0x44   : > { %2015 = vmatmul.mubr.msk.bf16.gmra.mrb[4].mxu0 %vm360_vm2, %v2721_v20 }
  0x45   : > { %2018 = vmatprep.mubr.msk.bf16.mxu0 %vm360_vm2, %v2725_v36 }
  0x48   : > { %1939 = vmatmul.mubr.msk.bf16.vlgmr.msra.gmra.mrb[0].mxu1 %vm360_vm2, %v2543_v11 }
  0x49   : > { %1955 = vmatpush3.bf16.msra.mxu1 %v702_v57  ;;  %1942 = vmatprep.mubr.msk.bf16.mxu1 %vm360_vm2, %v2560_v19 }
  0x4a   : > { %2213 = vmatprep.subr.msk.bf16.mxu1 %vm385_vm0, %v1777_v47 }
  0x4c   : > { %2019 = vmatmul.mubr.msk.bf16.gmra.mrb[8].mxu0 %vm360_vm2, %v2748_v58 }
  0x4d   : > { %2022 = vmatprep.mubr.msk.bf16.mxu0 %vm360_vm2, %v2755_v48 }
  0x50   : > { %1943 = vmatmul.mubr.msk.bf16.gmra.mrb[4].mxu1 %vm360_vm2, %v2569_v27 }
  0x51   : > { %1946 = vmatprep.mubr.msk.bf16.mxu1 %vm360_vm2, %v2584_v40 }
  0x54   : > { %2023 = vmatmul.mubr.msk.bf16.gmra.mrb[12].mxu0 %vm360_vm2, %v2768_v9 }
  0x55   : > { %2028 = vmatprep.mubr.msk.bf16.mxu0 %vm360_vm2, %v2560_v19 }
  0x58   : > { %1947 = vmatmul.mubr.msk.bf16.gmra.mrb[8].mxu1 %vm360_vm2, %v2593_v50 }
  0x59   : > { %1950 = vmatprep.mubr.msk.bf16.mxu1 %vm360_vm2, %v2639_v17 }
  0x5c   : > { %2029 = vmatmul.mubr.msk.bf16.vlgmr.msra.gmra.mrb[0].mxu0 %vm360_vm2, %v2569_v27 }
  0x5d   : > { %2045 = vmatpush3.bf16.msra.mxu0 %v1339_v22  ;;  %2032 = vmatprep.mubr.msk.bf16.mxu0 %vm360_vm2, %v2584_v40 }
  0x5e   : > { %2219 = vmatprep.subr.msk.bf16.mxu0 %vm385_vm0, %v1823_v3 }
  0x60   : > { %1951 = vmatmul.mubr.msk.bf16.gmra.mrb[12].mxu1 %vm360_vm2, %v2660_v35 }
  0x61   : > { %1956 = vmatprep.mubr.msk.bf16.mxu1 %vm360_vm2, %v667_v6 }
  0x64   : > { %2033 = vmatmul.mubr.msk.bf16.gmra.mrb[4].mxu0 %vm360_vm2, %v2593_v50 }
  0x65   : > { %2036 = vmatprep.mubr.msk.bf16.mxu0 %vm360_vm2, %v2639_v17 }
  0x68   : > { %1957 = vmatmul.mubr.msk.bf16.vlgmr.msra.gmra.mrb[0].mxu1 %vm360_vm2, %v2656_v30  ;;  %v945_v30 = vrot.slane %v256_v49, 1 }
  0x69   : > { %1973 = vmatpush3.bf16.msra.mxu1 %v824_v7  ;;  %1960 = vmatprep.mubr.msk.bf16.mxu1 %vm360_vm2, %v2687_v12 }
  0x6a   : > { %2215 = vmatprep.subr.msk.bf16.mxu1 %vm385_vm0, %v2519_v2  ;;  %v1468_v2 = vsel %vm385_vm0, %v1823_v3, 0 }
  0x6c   : > { %2037 = vmatmul.mubr.msk.bf16.gmra.mrb[8].mxu0 %vm360_vm2, %v2660_v35 }
  0x6d   : > { %2040 = vmatprep.mubr.msk.bf16.mxu0 %vm360_vm2, %v2730_v43 }
  0x70   : > { %1961 = vmatmul.mubr.msk.bf16.gmra.mrb[4].mxu1 %vm360_vm2, %v2691_v15 }
  0x71   : > { %1964 = vmatprep.mubr.msk.bf16.mxu1 %vm360_vm2, %v2721_v20 }
  0x74   : > { %2041 = vmatmul.mubr.msk.bf16.gmra.mrb[12].mxu0 %vm360_vm2, %v227_v8 }
  0x75   : > { %2046 = vmatprep.mubr.msk.bf16.mxu0 %vm360_vm2, %v2606_v56  ;;  %v943_v56 = vrot.slane %v255_v46, 1 }
  0x77   : > { %v944_v28 = vsel %vm293_vm1, %v942_v10, %v943_v56  ;;  %v946_v54 = vsel %vm293_vm1, %v943_v56, %v945_v30 }
  0x78   : > { %1965 = vmatmul.mubr.msk.bf16.gmra.mrb[8].mxu1 %vm360_vm2, %v2725_v36  ;;  %v949_v59 = vpack.c.bf16 %v946_v54, %v944_v28 }
  0x79   : > { %1968 = vmatprep.mubr.msk.bf16.mxu1 %vm360_vm2, %v2748_v58 }
  0x7c   : > { %2047 = vmatmul.mubr.msk.bf16.vlgmr.msra.gmra.mrb[0].mxu0 %vm360_vm2, %v2633_v13  ;;  %v257_v13 = vunpack.c.l.bf16 %v227_v8 }
  0x7d   : > { %2063 = vmatpush3.bf16.msra.mxu0 %v1468_v2  ;;  %2050 = vmatprep.mubr.msk.bf16.mxu0 %vm360_vm2, %v2654_v29  ;;  %v259_v29 = vunpack.c.l.bf16 %v229_v25 }
  0x7f   : > { %v1328_v0 = vrot.slane %v259_v29, 1 }
  0x80   : > { %1969 = vmatmul.mubr.msk.bf16.gmra.mrb[12].mxu1 %vm360_vm2, %v2755_v48 }
  0x81   : > { %1974 = vmatprep.mubr.msk.bf16.mxu1 %vm360_vm2, %v2543_v11  ;;  %v1325_v11 = vrot.slane %v257_v13, 1  ;;  %v1329_v31 = vsel %vm293_vm1, %v1326_v55, %v1328_v0 }
  0x83   : > { %v1327_v16 = vsel %vm293_vm1, %v1325_v11, %v1326_v55 }
  0x84   : > { %2051 = vmatmul.mubr.msk.bf16.gmra.mrb[4].mxu0 %vm360_vm2, %v2675_v53  ;;  %v1332_v23 = vpack.c.bf16 %v1329_v31, %v1327_v16 }
  0x85   : > { %2054 = vmatprep.mubr.msk.bf16.mxu0 %vm360_vm2, %v2685_v63 }
  0x88   : > { %1975 = vmatmul.mubr.msk.bf16.vlgmr.msra.gmra.mrb[0].mxu1 %vm360_vm2, %v2560_v19  ;;  %v1455_v19 = vrot.slane %v258_v26, 2 }
  0x89   : > { %2081 = vmatpush3.bf16.msra.mxu1 %v2530_v5  ;;  %1978 = vmatprep.mubr.msk.bf16.mxu1 %vm360_vm2, %v2569_v27  ;;  %v1454_v5 = vrot.slane %v257_v13, 2  ;;  %v1457_v27 = vrot.slane %v259_v29, 2 }
  0x8c   : > { %2055 = vmatmul.mubr.msk.bf16.gmra.mrb[8].mxu0 %vm360_vm2, %v2714_v45 }
  0x8d   : > { %2058 = vmatprep.mubr.msk.bf16.mxu0 %vm360_vm2, %v949_v59 }
  0x90   : > { %1979 = vmatmul.mubr.msk.bf16.gmra.mrb[4].mxu1 %vm360_vm2, %v2584_v40  ;;  %v1456_v40 = vsel %vm610_vm3, %v1454_v5, %v1455_v19 }
  0x91   : > { %1982 = vmatprep.mubr.msk.bf16.mxu1 %vm360_vm2, %v2593_v50  ;;  %v1458_v50 = vsel %vm610_vm3, %v1455_v19, %v1457_v27 }
  0x94   : > { %2059 = vmatmul.mubr.msk.bf16.gmra.mrb[12].mxu0 %vm360_vm2, %v1332_v23 }
  0x95   : > { %2064 = vmatprep.mubr.msk.bf16.mxu0 %vm360_vm2, %v2687_v12 }
  0x98   : > { %1983 = vmatmul.mubr.msk.bf16.gmra.mrb[8].mxu1 %vm360_vm2, %v2639_v17  ;;  %v1461_v17 = vpack.c.bf16 %v1458_v50, %v1456_v40 }
  0x99   : > { %1986 = vmatprep.mubr.msk.bf16.mxu1 %vm360_vm2, %v2660_v35 }
  0x9c   : > { %2065 = vmatmul.mubr.msk.bf16.vlgmr.msra.gmra.mrb[0].mxu0 %vm360_vm2, %v2691_v15 }
  0x9d   : > { %2068 = vmatprep.mubr.msk.bf16.mxu0 %vm360_vm2, %v2721_v20 }
  0xa0   : > { %1987 = vmatmul.mubr.msk.bf16.gmra.mrb[12].mxu1 %vm360_vm2, %v2730_v43 }
  0xa1   : > { %2000 = vmatprep.mubr.msk.bf16.mxu1 %vm360_vm2, %v2675_v53 }
  0xa4   : > { %2069 = vmatmul.mubr.msk.bf16.gmra.mrb[4].mxu0 %vm360_vm2, %v2725_v36 }
  0xa5   : > { %2072 = vmatprep.mubr.msk.bf16.mxu0 %vm360_vm2, %v2748_v58 }
  0xa8   : > { %2001 = vmatmul.mubr.msk.bf16.vlgmr.msra.gmra.mrb[8].mxu1 %vm360_vm2, %v2685_v63 }
  0xa9   : > { %2004 = vmatprep.mubr.msk.bf16.mxu1 %vm360_vm2, %v2714_v45 }
  0xac   : > { %2073 = vmatmul.mubr.msk.bf16.gmra.mrb[8].mxu0 %vm360_vm2, %v2755_v48 }
  0xad   : > { %2076 = vmatprep.mubr.msk.bf16.mxu0 %vm360_vm2, %v2768_v9 }
  0xb0   : > { %2005 = vmatmul.mubr.msk.bf16.gmra.mrb[12].mxu1 %vm360_vm2, %v949_v59 }
  0xb4   : > { %2077 = vmatmul.mubr.msk.bf16.gmra.mrb[12].mxu0 %vm360_vm2, %v1461_v17 }
 0x15b   : > { %v1976_v35 = vpop.f32.mrb[0].mxu1 }
 0x15c   : > { %v860_v53 = vpop.f32.mrb[1].mxu1 }
 0x15d   : > { %v1977_v63 = vpop.f32.mrb[2].mxu1 }
 0x15e   : > { %v863_v12 = vpop.f32.mrb[3].mxu1 }
 0x163   : > { %v1980_v15 = vpop.f32.mrb[4].mxu1 }
 0x164   : > { %v876_v45 = vpop.f32.mrb[5].mxu1 }
 0x165   : > { %v1981_v20 = vpop.f32.mrb[6].mxu1 }
 0x166   : > { %v879_v36 = vpop.f32.mrb[7].mxu1 }
 0x16f   : > { %v2066_v37 = vpop.f32.mrb[0].mxu0 }
 0x170   : > { %v2082_v38 = vadd.f32 %v2066_v37, %v1976_v35  ;;  %v1504_v42 = vpop.f32.mrb[1].mxu0 }
 0x171   : > { %v2083_v43 = vadd.f32 %v1504_v42, %v860_v53  ;;  %v2067_v44 = vpop.f32.mrb[2].mxu0 }
 0x172   : > { %v2084_v34 = vadd.f32 %v2067_v44, %v1977_v63  ;;  %v1507_v32 = vpop.f32.mrb[3].mxu0  ;;  %v1592_v49 = vadd.f32 %v2082_v38, %v2895_v41 }
 0x173   : > { %v1590_v33 = vadd.f32 %v2083_v43, %v2895_v41  ;;  %v2085_v46 = vadd.f32 %v1507_v32, %v863_v12 }
 0x174   : > { %v1593_v57 = vadd.f32 %v2084_v34, %v2895_v41  ;;  %v1608_v62 = vmax.f32 %v1592_v49, 0.0 }
 0x175   : > { %v1591_v52 = vadd.f32 %v2085_v46, %v2895_v41  ;;  %v1606_v39 = vmax.f32 %v1590_v33, 0.0 }
 0x176   : > { %v1609_v18 = vmax.f32 %v1593_v57, 0.0 }
 0x177   : > { %v1607_v58 = vmax.f32 %v1591_v52, 0.0  ;;  %v2070_v47 = vpop.f32.mrb[4].mxu0 }
 0x178   : > { %v2086_v48 = vadd.f32 %v2070_v47, %v1980_v15  ;;  %v1520_v61 = vpop.f32.mrb[5].mxu0 }
 0x179   : > { %v1623_v1 = vadd.f32 %v1607_v58, %v1606_v39  ;;  %v2087_v51 = vadd.f32 %v1520_v61, %v876_v45  ;;  %v2071_v4 = vpop.f32.mrb[6].mxu0 }
 0x17a   : > { %v2088_v9 = vadd.f32 %v2071_v4, %v1981_v20  ;;  %v1523_v14 = vpop.f32.mrb[7].mxu0  ;;  %v1596_v3 = vadd.f32 %v2086_v48, %v2895_v41 }
 0x17b   : > { %v1624_v21 = vadd.f32 %v1623_v1, %v1608_v62  ;;  %v1594_v22 = vadd.f32 %v2087_v51, %v2895_v41  ;;  %v2089_v24 = vadd.f32 %v1523_v14, %v879_v36  ;;  %v2002_v60 = vpop.f32.mrb[8].mxu1 }
 0x17c   : > { %v1024_v2 = vpop.f32.mrb[9].mxu1  ;;  %v1597_v30 = vadd.f32 %v2088_v9, %v2895_v41  ;;  %v1612_v54 = vmax.f32 %v1596_v3, 0.0 }
 0x17d   : > { %v1610_v6 = vmax.f32 %v1594_v22, 0.0  ;;  %v1625_v7 = vadd.f32 %v1624_v21, %v1609_v18  ;;  %v1595_v8 = vadd.f32 %v2089_v24, %v2895_v41  ;;  %v2003_v10 = vpop.f32.mrb[10].mxu1 }
 0x17e   : > { %v1027_v26 = vpop.f32.mrb[11].mxu1  ;;  %v1613_v31 = vmax.f32 %v1597_v30, 0.0 }
 0x17f   : > { %v1626_v56 = vadd.f32 %v1625_v7, %v1610_v6  ;;  %v1611_v25 = vmax.f32 %v1595_v8, 0.0  ;;  %v2074_v13 = vpop.f32.mrb[8].mxu0  ;;  %v1622_v6 = vld [vmem:[#allocation2] sm:$0x1] }
 0x180   : > { %v2090_v29 = vadd.f32 %v2074_v13, %v2002_v60  ;;  %v1536_v28 = vpop.f32.mrb[9].mxu0 }
 0x181   : > { %v1627_v11 = vadd.f32 %v1626_v56, %v1611_v25  ;;  %v2091_v55 = vadd.f32 %v1536_v28, %v1024_v2  ;;  %v2075_v59 = vpop.f32.mrb[10].mxu0 }
 0x182   : > { %v2092_v0 = vadd.f32 %v2075_v59, %v2003_v10  ;;  %v1539_v16 = vpop.f32.mrb[11].mxu0  ;;  %v1600_v40 = vadd.f32 %v2090_v29, %v2895_v41 }
 0x183   : > { %v1628_v23 = vadd.f32 %v1627_v11, %v1612_v54  ;;  %v1598_v5 = vadd.f32 %v2091_v55, %v2895_v41  ;;  %v2093_v19 = vadd.f32 %v1539_v16, %v1027_v26  ;;  %v2006_v27 = vpop.f32.mrb[12].mxu1 }
 0x184   : > { %v1040_v53 = vpop.f32.mrb[13].mxu1  ;;  %v1601_v15 = vadd.f32 %v2092_v0, %v2895_v41  ;;  %v1616_v42 = vmax.f32 %v1600_v40, 0.0 }
 0x185   : > { %v1614_v50 = vmax.f32 %v1598_v5, 0.0  ;;  %v1629_v17 = vadd.f32 %v1628_v23, %v1613_v31  ;;  %v1599_v35 = vadd.f32 %v2093_v19, %v2895_v41  ;;  %v2007_v63 = vpop.f32.mrb[14].mxu1 }
 0x186   : > { %v1043_v36 = vpop.f32.mrb[15].mxu1  ;;  %v1617_v46 = vmax.f32 %v1601_v15, 0.0 }
 0x187   : > { %v1630_v12 = vadd.f32 %v1629_v17, %v1614_v50  ;;  %v1615_v45 = vmax.f32 %v1599_v35, 0.0  ;;  %v2078_v20 = vpop.f32.mrb[12].mxu0 }
 0x188   : > { %v2094_v37 = vadd.f32 %v2078_v20, %v2006_v27  ;;  %v1552_v38 = vpop.f32.mrb[13].mxu0 }
 0x189   : > { %v1631_v43 = vadd.f32 %v1630_v12, %v1615_v45  ;;  %v2095_v44 = vadd.f32 %v1552_v38, %v1040_v53  ;;  %v2079_v34 = vpop.f32.mrb[14].mxu0 }
 0x18a   : > { %v2096_v32 = vadd.f32 %v2079_v34, %v2007_v63  ;;  %v1555_v33 = vpop.f32.mrb[15].mxu0  ;;  %v1604_v57 = vadd.f32 %v2094_v37, %v2895_v41 }
 0x18b   : > { %v1632_v49 = vadd.f32 %v1631_v43, %v1616_v42  ;;  %v1602_v52 = vadd.f32 %v2095_v44, %v2895_v41  ;;  %v2097_v39 = vadd.f32 %v1555_v33, %v1043_v36 }
 0x18c   : > { %v1605_v62 = vadd.f32 %v2096_v32, %v2895_v41  ;;  %v1620_v51 = vmax.f32 %v1604_v57, 0.0 }
 0x18d   : > { %v1618_v58 = vmax.f32 %v1602_v52, 0.0  ;;  %v1633_v47 = vadd.f32 %v1632_v49, %v1617_v46  ;;  %v1603_v48 = vadd.f32 %v2097_v39, %v2895_v41 }
 0x18e   : > { %v1621_v9 = vmax.f32 %v1605_v62, 0.0 }
 0x18f   : > { %v1634_v61 = vadd.f32 %v1633_v47, %v1618_v58  ;;  %v1619_v1 = vmax.f32 %v1603_v48, 0.0 }
 0x191   : > { %v1635_v4 = vadd.f32 %v1634_v61, %v1619_v1 }
 0x193   : > { %v1636_v14 = vadd.f32 %v1635_v4, %v1620_v51 }
 0x195   : > { %v1637_v18 = vadd.f32 %v1636_v14, %v1621_v9 }
 0x197   : > { %v1638_v21 = vrot.slane %v1637_v18, 4 }
 0x199   : > { %v1639_v22 = vadd.f32 %v1638_v21, %v1637_v18 }
 0x19b   : > { %v1640_v24 = vrot.slane %v1639_v22, 2 }
 0x19d   : > { %v1641_v60 = vadd.f32 %v1640_v24, %v1639_v22 }
 0x19f   : > { %v1642_v3 = vrot.slane %v1641_v60, 1  ;;  %1649 = sbr.rel (%p1833_p0) target bundleno = 432 (0x1b0), region = 40 }
 0x1a1   : > { %v1643_v7 = vadd.f32 %v1642_v3, %v1641_v60 }
 0x1a3   : > { %v1644_v8 = vadd.f32 %v1643_v7, %v1622_v6 }
 0x1a5   : > { %1645 = vst [vmem:[#allocation2] sm:$0x1] %v1644_v8 }
 0x1ac   : > { %v1650_v2 = vld [vmem:[#allocation2] sm:$0x1] }
 0x1ad   : > { %v1651_v41 = vmul.f32 0.00390625, %v1650_v2 }
 0x1af   : > { %1652 = vst [vmem:[%s2510_s9] sm:$0x1] %v1651_v41 }
 0x1b0 PF: > { %s1834_s5 = sshll.u32 %s2395_s16, 4  ;;  %s1666_s11 = sshll.u32 %s2510_s9, 4  ;;  %s1667_s11 = int_to_ptr.vmem [resolvable:$true] %s1666_s11 }
 0x1b1   : > { %s2919_s10 = scalar_lea.hbm %s2972_s3, %s1834_s5  ;;  %s1654_s15 = scalar_lea.sflag [#allocation4], %s183_s29 }
 0x1b2   : > { %s2313_s20 = scalar_lea.vmem %s1667_s11, 16  ;;  %s2410_s21 = smov [#allocation3]  }
 0x1b3   : > { %p2314_p1 = scmp.ne.s32.totalorder %s1667_s11, %s2313_s20  ;;  %s2317_s26 = sshll.u32 %s2410_s21, 4  ;;  %s2318_s26 = int_to_ptr.vmem [resolvable:$false] %s2317_s26 }
 0x1b4   : > { %s2319_s27 = scalar_lea.vmem %s2318_s26, 32  ;;  %p2320_p5 = scmp.lt.s32.totalorder %s1667_s11, %s2318_s26 }
 0x1b5   : > { %p2315_p2 = pnand %p2314_p1, %p2480_p3  ;;  %p2321_p6 = scmp.lt.s32.totalorder %s2319_s27, %s2313_s20 }
 0x1b7   : > { %p2316_p4 = pneg %p2315_p2  ;;  %p2322_p7 = por %p2321_p6, %p2320_p5 }
 0x1b9   : > { %p2323_p8 = pnand %p2322_p7, %p2316_p4 }
 0x1bb   : > { %2326 = shalt.err (!%p2323_p8)
}
 0x1bc   : > { %s2327_s16 = scalar_lea.hbm %s2919_s10, 16  ;;  %s2331_s30 = scalar_lea.hbm %s2972_s3, 32 }
 0x1bd   : > { %p2328_p10 = scmp.ne.s32.totalorder %s2919_s10, %s2327_s16  ;;  %p2332_p13 = scmp.lt.u32.totalorder %s2919_s10, %s2972_s3 }
 0x1be   : > { %p2333_p0 = scmp.lt.u32.totalorder %s2331_s30, %s2327_s16  ;;  %p2335_p2 = scmp.lt.u32.totalorder %s2327_s16, %s2919_s10 }
 0x1bf   : > { %p2329_p11 = pnand %p2328_p10, %p2480_p3 }
 0x1c0   : > { %p2334_p1 = por %p2333_p0, %p2332_p13 }
 0x1c1   : > { %p2330_p12 = pneg %p2329_p11 }
 0x1c2   : > { %p2336_p4 = por %p2335_p2, %p2334_p1 }
 0x1c4   : > { %p2337_p5 = pnand %p2336_p4, %p2330_p12 }
 0x1c6   : > { %2340 = shalt.err (!%p2337_p5)
}
 0x1c7   : > { %2221 = dma.vmem_to_hbm [thread:$0]  (%p2480_p3), %s1667_s11, 16, %s2919_s10, %s1654_s15  }
 0x1c8 PF: > { %p2227_p6 = scmp.ge.s32.totalorder %s2407_s19, 2  ;;  %s1678_s5 = sand.u32 1, %s2379_s12  }
 0x1c9   : > { %s1679_s6 = scalar_lea.sflag [#allocation4], %s1678_s5 }
 0x1ca   : > { %p2224_p7 = pnand %p2227_p6, %p2490_p9 }
 0x1cc   : > { %2374 = dma.done.wait (!%p2224_p7), %s1679_s6, 16  }
 0x1cd   : > { %2376 = vsyncadd (!%p2224_p7), %s1679_s6, 4294967280  ;;  %s16_s19 = sadd.s32 1, %s2407_s19   ;;  %s2975_s12 = smov %s2383_s13 }
 0x1ce   : > { %p13_p8 = scmp.ge.s32.totalorder %s16_s19, 6   ;;  %s2976_s13 = smov %s2387_s14 }
 0x1cf   : > { %s2977_s14 = smov %s2498_s28  ;;  %s2978_s15 = smov %s2399_s17 }
 0x1d0   : > { %s2979_s16 = smov %s2403_s18  ;;  %s2980_s17 = smov %s2983_s22 }
 0x1d1   : > { %s2981_s18 = smov %s2987_s23  ;;  %15 = sbr.rel (!%p13_p8) target bundleno = 5 (0x5), region = 83 }
 0x1d8   :  { %1683 = vsyncpa [#allocation4], 1 }
 0x1d9   :  { %1685 = vsyncpa [#allocation4 + $0x1], 1 }

</bundles_post_ra>
